<compile_context>
chip_gen: v5e
topology: v5e:2x2
jax: 0.10.0
libtpu: 0.0.40
codegen_flags: <defaults>
</compile_context>

<pallas_src>
import functools
import math

import jax
import jax.numpy as jnp
from jax.experimental import pallas as pl
from jax.experimental.pallas import tpu as pltpu

_MAX_TILE_B = 1024
_MIN_GRID_STEPS = 4            # >=2 shards across v7x TCs, >=4 keeps DMAs overlapped
_VMEM_HEADROOM = 0.8           # fraction of the remaining budget given to batch tiles
_RESIDENT_WEIGHT_FRACTION = 0.6  # above this, go to the per-layer fallback path


def _round_up(x, m):
    return ((x + m - 1) // m) * m


# ------------------------------------------------------------------ hw queries
_ALIGN_CACHE = None


def _feature_align():
    """MXU-friendly alignment for feature dims > 128 (generation dependent)."""
    global _ALIGN_CACHE
    if _ALIGN_CACHE is None:
        align = 256  # v6e / v7x: 2x256x256 MXU
        try:
            kind = jax.devices()[0].device_kind.lower()
            if any(tag in kind for tag in ("v2", "v3", "v4", "v5")):
                align = 128  # 128x128 MXU generations
        except Exception:
            pass
        _ALIGN_CACHE = align
    return _ALIGN_CACHE


def _pad_feature(d):
    if d <= 128:
        return _round_up(d, 128)
    return _round_up(d, _feature_align())


_VMEM_LIMIT_CACHE = None


def _vmem_limit_bytes():
    """Per-generation VMEM limit (75% of physical, conservative fallback)."""
    global _VMEM_LIMIT_CACHE
    if _VMEM_LIMIT_CACHE is None:
        cap = 0
        try:
            cap = int(getattr(pltpu.get_tpu_info(), "vmem_capacity_bytes", 0) or 0)
        except Exception:
            cap = 0
        if cap <= 0:
            cap = 64 * 1024 * 1024  # conservative default: v7x per-TC physical VMEM
        _VMEM_LIMIT_CACHE = min((cap * 3) // 4, 100 * 1024 * 1024)
    return _VMEM_LIMIT_CACHE


def _sublane_for(dtype):
    """Dtype-aware sublane multiple: 8 for 32-bit, 16 for bf16, 32 for int8."""
    return max(8, 32 // jnp.dtype(dtype).itemsize)


def _probe_single_buffer():
    if not hasattr(pl, "Buffered"):
        return False
    try:
        pl.BlockSpec((8, 128), lambda i: (0, 0), pipeline_mode=pl.Buffered(1))
        return True
    except Exception:
        return False


_SINGLE_BUFFER_OK = _probe_single_buffer()


# ------------------------------------------------------------------ kernels
def _fused_mlp_kernel(*refs, num_layers, acts, out_widths):
    """Fused MLP: refs = (x, w0, ..., w_{L-1}, bias_stack, out).

    One batch tile is loaded; every layer runs in-VMEM.  Accumulation is f32
    (preferred_element_type) with a single cast at the final store.
    """
    x_ref = refs[0]
    b_ref = refs[1 + num_layers]
    o_ref = refs[2 + num_layers]

    b_all = b_ref[...]                     # tiny (num_layers, max_out_p) f32 block
    h = x_ref[...]                         # native dtype; no up-front f32 cast
    for n in range(num_layers):
        w = refs[1 + n][...]
        lhs = h if h.dtype == w.dtype else h.astype(w.dtype)
        h = jnp.dot(lhs, w, preferred_element_type=jnp.float32)
        h = h + b_all[n:n + 1, :out_widths[n]].astype(jnp.float32)
        if acts[n]:
            h = jnp.maximum(h, 0.0)        # ReLU
    o_ref[...] = h.astype(o_ref.dtype)


def _layer_matmul_kernel(x_ref, w_ref, b_ref, o_ref, acc_ref, *, act):
    """Fallback per-layer tiled matmul + bias + optional ReLU (K-accumulated)."""
    @pl.when(pl.program_id(2) == 0)
    def _():
        acc_ref[...] = jnp.zeros_like(acc_ref)

    acc_ref[...] += jnp.dot(x_ref[...], w_ref[...],
                            preferred_element_type=jnp.float32)

    @pl.when(pl.program_id(2) == pl.num_programs(2) - 1)
    def _():
        h = acc_ref[...] + b_ref[...].astype(jnp.float32)
        if act:
            h = jnp.maximum(h, 0.0)
        o_ref[...] = h.astype(o_ref.dtype)


# ------------------------------------------------------------------ tiling
def _choose_tile_b(batch, in_p, out_p, max_width, itemsize, resident_bytes,
                   vmem_limit, sublane):
    """Largest batch tile fitting the budget left after the resident weights."""
    budget = int((vmem_limit - resident_bytes) * _VMEM_HEADROOM)
    if budget <= 0:
        return None
    # double-buffered x/out tiles + a few f32 intermediates per row
    per_row = 2 * (in_p + out_p) * itemsize + 3 * max_width * 4
    rows = budget // max(per_row, 1)
    rows = (rows // sublane) * sublane
    if rows < sublane:
        return None
    rows = min(rows, _MAX_TILE_B)
    batch_r = _round_up(batch, sublane)
    # Keep >= _MIN_GRID_STEPS grid iterations when the batch allows it
    # (v7x megacore sharding + DMA/compute overlap).
    want = max(sublane, _round_up(pl.cdiv(batch_r, _MIN_GRID_STEPS), sublane))
    return min(rows, want, batch_r)


def _run_fused(x_p, weights, bias_stack, acts, out_widths, tile_b, vmem_limit,
               single_buffer):
    num_layers = len(weights)
    batch_p, in_p = x_p.shape
    out_p = weights[-1].shape[1]

    def resident(shape):
        if single_buffer:
            return pl.BlockSpec(shape, lambda i: (0,) * len(shape),
                                pipeline_mode=pl.Buffered(1))
        return pl.BlockSpec(shape, lambda i: (0,) * len(shape))

    in_specs = [pl.BlockSpec((tile_b, in_p), lambda i: (i, 0))]
    in_specs += [resident(w.shape) for w in weights]
    in_specs.append(resident(bias_stack.shape))

    flops = 2 * batch_p * sum(w.shape[0] * w.shape[1] for w in weights)
    bytes_accessed = (
        x_p.size * x_p.dtype.itemsize
        + batch_p * out_p * x_p.dtype.itemsize
        + sum(int(w.size) * w.dtype.itemsize for w in weights)
        + int(bias_stack.size) * bias_stack.dtype.itemsize)

    kernel = functools.partial(_fused_mlp_kernel, num_layers=num_layers,
                               acts=acts, out_widths=out_widths)

    return pl.pallas_call(
        kernel,
        out_shape=jax.ShapeDtypeStruct((batch_p, out_p), x_p.dtype),
        grid=(batch_p // tile_b,),
        in_specs=in_specs,
        out_specs=pl.BlockSpec((tile_b, out_p), lambda i: (i, 0)),
        compiler_params=pltpu.CompilerParams(
            dimension_semantics=("parallel",),
            vmem_limit_bytes=vmem_limit),
        cost_estimate=pl.CostEstimate(
            flops=flops, transcendentals=0, bytes_accessed=bytes_accessed),
    )(x_p, *weights, bias_stack)


def _single_layer_forward(x, w, b, act, out_dtype, vmem_limit, sublane):
    """Fallback: one tiled matmul+bias+act pallas_call (used when weights are
    too large to keep fully VMEM-resident in the fused kernel)."""
    M, K = x.shape
    _, N = w.shape
    tm = min(_round_up(M, sublane), 256)
    tk = min(K, 512)
    tn = min(N, 512)
    Mp, Kp, Np = _round_up(M, tm), _round_up(K, tk), _round_up(N, tn)
    x_p = jnp.pad(x, ((0, Mp - M), (0, Kp - K)))
    w_p = jnp.pad(w, ((0, Kp - K), (0, Np - N)))
    b_p = jnp.pad(b.reshape(1, -1), ((0, 0), (0, Np - N)))

    out = pl.pallas_call(
        functools.partial(_layer_matmul_kernel, act=bool(act)),
        out_shape=jax.ShapeDtypeStruct((Mp, Np), out_dtype),
        grid=(Mp // tm, Np // tn, Kp // tk),
        in_specs=[pl.BlockSpec((tm, tk), lambda i, j, k: (i, k)),
                  pl.BlockSpec((tk, tn), lambda i, j, k: (k, j)),
                  pl.BlockSpec((1, tn), lambda i, j, k: (0, j))],
        out_specs=pl.BlockSpec((tm, tn), lambda i, j, k: (i, j)),
        scratch_shapes=[pltpu.VMEM((tm, tn), jnp.float32)],
        compiler_params=pltpu.CompilerParams(
            dimension_semantics=("parallel", "parallel", "arbitrary"),
            vmem_limit_bytes=vmem_limit),
    )(x_p, w_p, b_p)
    return out[:M, :N]


# ------------------------------------------------------------------ forward
def mlp_forward(x, weights_p, bias_stack, acts, out_widths, output_size,
                force_fallback=False):
    """Run the whole MLP on TPU.  weights_p / bias_stack are lane-padded."""
    batch, in_f = x.shape
    num_layers = len(weights_p)
    in_p = weights_p[0].shape[0]
    out_p = weights_p[-1].shape[1]
    max_width = max([in_p] + [w.shape[1] for w in weights_p])
    vmem_limit = _vmem_limit_bytes()
    sublane = _sublane_for(x.dtype)

    base_resident = (sum(int(w.size) * w.dtype.itemsize for w in weights_p)
                     + int(bias_stack.size) * bias_stack.dtype.itemsize)

    if not force_fallback:
        attempts = (True, False) if _SINGLE_BUFFER_OK else (False,)
        for single_buffer in attempts:
            buf_count = 1 if single_buffer else 2
            resident_bytes = buf_count * base_resident
            if resident_bytes > int(_RESIDENT_WEIGHT_FRACTION * vmem_limit):
                continue
            tile_b = _choose_tile_b(batch, in_p, out_p, max_width,
                                    x.dtype.itemsize, resident_bytes,
                                    vmem_limit, sublane)
            if tile_b is None:
                continue
            batch_p = _round_up(batch, tile_b)
            x_p = jnp.pad(x, ((0, batch_p - batch), (0, in_p - in_f)))
            try:
                out = _run_fused(x_p, weights_p, bias_stack, acts, out_widths,
                                 tile_b, vmem_limit, single_buffer)
                return out[:batch, :output_size]
            except Exception:
                if not single_buffer:
                    raise          # genuine failure; don't mask it
                # retry with default (double-buffered) specs

    # Per-layer fallback: activations round-trip HBM, but weights are streamed
    # in (tk, tn) tiles instead of being fully VMEM-resident.
    h = jnp.pad(x, ((0, 0), (0, in_p - in_f)))
    for n in range(num_layers):
        b_row = bias_stack[n, :out_widths[n]]
        h = _single_layer_forward(h, weights_p[n], b_row, acts[n],
                                  x.dtype, vmem_limit, sublane)
    return h[:batch, :output_size]


# ------------------------------------------------------------------ module
class MLP:
    """JAX/Pallas port of the PyTorch MLP module (act_fn = ReLU)."""

    def __init__(self, input_size, hidden_size, output_size, num_layers,
                 use_act_out=False, key=None, dtype=jnp.float32,
                 compute_dtype=None):
        assert num_layers >= 0
        self.num_layers = num_layers
        self.output_size = output_size
        self.use_act_out = use_act_out
        self._compute_dtype = jnp.dtype(compute_dtype if compute_dtype is not None
                                        else dtype)
        self.params = []        # raw (W, b, act) — reference semantics
        self._weights_p = []    # zero-padded, compute-dtype copies for the kernel
        self._acts = []
        self._out_widths = []

        if num_layers == 0:
            if input_size != output_size:
                raise ValueError(
                    "input_size != output_size [{}, {}]".format(input_size, output_size))
            self._bias_stack = None
            return

        if key is None:
            key = jax.random.PRNGKey(0)

        raw_biases = []
        for n in range(num_layers):
            if n == 0:
                in_i = input_size
                out_i = output_size if num_layers == 1 else hidden_size
                act = use_act_out if num_layers == 1 else True
            elif n == num_layers - 1:
                in_i, out_i = hidden_size, output_size
                act = use_act_out
            else:
                in_i, out_i = hidden_size, hidden_size
                act = True

            key, kw, kb = jax.random.split(key, 3)
            # nn.Linear-style uniform(-1/sqrt(in), 1/sqrt(in)) init.
            bound = 1.0 / math.sqrt(in_i)
            w = jax.random.uniform(kw, (in_i, out_i), dtype, -bound, bound)
            b = jax.random.uniform(kb, (out_i,), dtype, -bound, bound)
            self.params.append((w, b, act))
            raw_biases.append(b)

            in_pad = _pad_feature(in_i)
            out_pad = _pad_feature(out_i)
            w_p = jnp.pad(w, ((0, in_pad - in_i), (0, out_pad - out_i)))
            self._weights_p.append(w_p.astype(self._compute_dtype))
            self._acts.append(bool(act))
            self._out_widths.append(out_pad)

        # Stack all biases into one (num_layers, max_out_p) f32 array:
        # one DMA / buffer pair instead of num_layers tiny ones; bias add is f32.
        max_out_p = max(self._out_widths)
        self._bias_stack = jnp.stack(
            [jnp.pad(b.astype(jnp.float32), (0, max_out_p - b.shape[0]))
             for b in raw_biases])
        self._acts = tuple(self._acts)
        self._out_widths = tuple(self._out_widths)

    def __call__(self, x, force_fallback=False):
        if self.num_layers == 0:
            return x  # Identity
        return mlp_forward(x, self._weights_p, self._bias_stack, self._acts,
                           self._out_widths, self.output_size,
                           force_fallback=force_fallback)


def _reference(x, params):
    ref = x
    for (w, b, act) in params:
        ref = ref @ w + b
        if act:
            ref = jnp.maximum(ref, 0.0)
    return ref


if __name__ == "__main__":
    key = jax.random.PRNGKey(0)
    kx, kx2, kp, kp2 = jax.random.split(key, 4)

    batch, input_size, hidden_size, output_size, num_layers = 8, 16, 32, 8, 3
    x = jax.random.normal(kx, (batch, input_size), jnp.float32)

    mlp = MLP(input_size, hidden_size, output_size, num_layers,
              use_act_out=False, key=kp)

    out = jax.block_until_ready(mlp(x))
    ref = _reference(x, mlp.params)
    assert out.shape == (batch, output_size)
    assert jnp.allclose(out, ref, atol=1e-5, rtol=1e-5)

    # Batch that is not a multiple of the sublane (exercises padding/slicing).
    x2 = jax.random.normal(kx2, (6, input_size), jnp.float32)
    out2 = jax.block_until_ready(mlp(x2))
    ref2 = _reference(x2, mlp.params)
    assert out2.shape == (6, output_size)
    assert jnp.allclose(out2, ref2, atol=1e-5, rtol=1e-5)

    # Per-layer fallback path (used automatically when the resident weights
    # would not fit in VMEM) — forced here at small shapes for coverage.
    out3 = jax.block_until_ready(mlp(x, force_fallback=True))
    assert jnp.allclose(out3, ref, atol=1e-5, rtol=1e-5)

    # Single layer with activation on the output.
    mlp1 = MLP(input_size, hidden_size, output_size, 1, use_act_out=True, key=kp2)
    out4 = jax.block_until_ready(mlp1(x))
    ref4 = _reference(x, mlp1.params)
    assert jnp.allclose(out4, ref4, atol=1e-5, rtol=1e-5)

    # bf16 compute path: weights/matmul in bf16, f32 accumulate + bias + ReLU.
    mlp_bf16 = MLP(input_size, hidden_size, output_size, num_layers,
                   use_act_out=False, key=kp, compute_dtype=jnp.bfloat16)
    out5 = jax.block_until_ready(mlp_bf16(x))
    ref5 = _reference(
        x, [(w.astype(jnp.bfloat16).astype(jnp.float32), b, a)
            for (w, b, a) in mlp_bf16.params])
    assert out5.dtype == x.dtype
    assert jnp.allclose(out5, ref5, atol=5e-2, rtol=5e-2)

    # num_layers == 0 -> Identity path.
    ident = MLP(input_size, hidden_size, input_size, 0)
    assert jnp.array_equal(ident(x), x)

    print("KERNEL_OK")
</pallas_src>

<mosaic_0001>
module attributes {stable_mosaic.version = 11 : i64} {
  func.func @_fused_mlp_kernel(%arg0: i32, %arg1: memref<8x128xf32, #tpu.memory_space<vmem>>, %arg2: memref<128x128xf32, #tpu.memory_space<vmem>>, %arg3: memref<128x128xf32, #tpu.memory_space<vmem>>, %arg4: memref<128x128xf32, #tpu.memory_space<vmem>>, %arg5: memref<3x128xf32, #tpu.memory_space<vmem>>, %arg6: memref<8x128xf32, #tpu.memory_space<vmem>>) attributes {dimension_semantics = [#tpu.dimension_semantics<parallel>], iteration_bounds = array<i64: 1>, scalar_prefetch = 0 : i64, scratch_operands = 0 : i64, tpu.core_type = #tpu.core_type<tc>, window_params = [{transform_indices = @transform_0, window_bounds = array<i64: 8, 128>}, {pipeline_mode = #tpu.pipeline_mode<synchronous>, transform_indices = @transform_1, window_bounds = array<i64: 128, 128>}, {pipeline_mode = #tpu.pipeline_mode<synchronous>, transform_indices = @transform_2, window_bounds = array<i64: 128, 128>}, {pipeline_mode = #tpu.pipeline_mode<synchronous>, transform_indices = @transform_3, window_bounds = array<i64: 128, 128>}, {pipeline_mode = #tpu.pipeline_mode<synchronous>, transform_indices = @transform_4, window_bounds = array<i64: 3, 128>}, {transform_indices = @transform_5, window_bounds = array<i64: 8, 128>}]} {
    %c0 = arith.constant 0 : index
    %c0_0 = arith.constant 0 : index
    %0 = vector.load %arg5[%c0, %c0_0] : memref<3x128xf32, #tpu.memory_space<vmem>>, vector<3x128xf32>
    %c0_1 = arith.constant 0 : index
    %c0_2 = arith.constant 0 : index
    %1 = vector.load %arg1[%c0_1, %c0_2] : memref<8x128xf32, #tpu.memory_space<vmem>>, vector<8x128xf32>
    %c0_3 = arith.constant 0 : index
    %c0_4 = arith.constant 0 : index
    %2 = vector.load %arg2[%c0_3, %c0_4] : memref<128x128xf32, #tpu.memory_space<vmem>>, vector<128x128xf32>
    %cst = arith.constant dense<0.000000e+00> : vector<8x128xf32>
    %3 = tpu.matmul %1, %2, %cst {dimension_numbers = #tpu.dot_dimension_numbers<[1], [0], [0], [1], [0, 0, 1, 1], [], []>} : vector<8x128xf32>, vector<128x128xf32>, vector<8x128xf32> -> vector<8x128xf32>
    %4 = vector.extract_strided_slice %0 {offsets = [0, 0], sizes = [1, 128], strides = [1, 1]} : vector<3x128xf32> to vector<1x128xf32>
    %5 = vector.broadcast %4 : vector<1x128xf32> to vector<8x128xf32>
    %6 = arith.addf %3, %5 : vector<8x128xf32>
    %cst_5 = arith.constant 0.000000e+00 : f32
    %7 = vector.broadcast %cst_5 : f32 to vector<8x128xf32>
    %8 = arith.maximumf %6, %7 : vector<8x128xf32>
    %c0_6 = arith.constant 0 : index
    %c0_7 = arith.constant 0 : index
    %9 = vector.load %arg3[%c0_6, %c0_7] : memref<128x128xf32, #tpu.memory_space<vmem>>, vector<128x128xf32>
    %cst_8 = arith.constant dense<0.000000e+00> : vector<8x128xf32>
    %10 = tpu.matmul %8, %9, %cst_8 {dimension_numbers = #tpu.dot_dimension_numbers<[1], [0], [0], [1], [0, 0, 1, 1], [], []>} : vector<8x128xf32>, vector<128x128xf32>, vector<8x128xf32> -> vector<8x128xf32>
    %11 = vector.extract_strided_slice %0 {offsets = [1, 0], sizes = [1, 128], strides = [1, 1]} : vector<3x128xf32> to vector<1x128xf32>
    %12 = vector.broadcast %11 : vector<1x128xf32> to vector<8x128xf32>
    %13 = arith.addf %10, %12 : vector<8x128xf32>
    %cst_9 = arith.constant 0.000000e+00 : f32
    %14 = vector.broadcast %cst_9 : f32 to vector<8x128xf32>
    %15 = arith.maximumf %13, %14 : vector<8x128xf32>
    %c0_10 = arith.constant 0 : index
    %c0_11 = arith.constant 0 : index
    %16 = vector.load %arg4[%c0_10, %c0_11] : memref<128x128xf32, #tpu.memory_space<vmem>>, vector<128x128xf32>
    %cst_12 = arith.constant dense<0.000000e+00> : vector<8x128xf32>
    %17 = tpu.matmul %15, %16, %cst_12 {dimension_numbers = #tpu.dot_dimension_numbers<[1], [0], [0], [1], [0, 0, 1, 1], [], []>} : vector<8x128xf32>, vector<128x128xf32>, vector<8x128xf32> -> vector<8x128xf32>
    %18 = vector.extract_strided_slice %0 {offsets = [2, 0], sizes = [1, 128], strides = [1, 1]} : vector<3x128xf32> to vector<1x128xf32>
    %19 = vector.broadcast %18 : vector<1x128xf32> to vector<8x128xf32>
    %20 = arith.addf %17, %19 : vector<8x128xf32>
    %c0_13 = arith.constant 0 : index
    %c0_14 = arith.constant 0 : index
    %21 = vector.load %arg6[%c0_13, %c0_14] : memref<8x128xf32, #tpu.memory_space<vmem>>, vector<8x128xf32>
    tpu.vector_store %arg6[%c0_13, %c0_14], %20 {strides = array<i32>} : memref<8x128xf32, #tpu.memory_space<vmem>>, vector<8x128xf32>,
    return
  }
  func.func @transform_0(%arg0: i32) -> (i32, i32) {
    %c0_i32 = arith.constant 0 : i32
    %c0_i32_0 = arith.constant 0 : i32
    return %arg0, %c0_i32 : i32, i32
  }
  func.func @transform_1(%arg0: i32) -> (i32, i32) {
    %c0_i32 = arith.constant 0 : i32
    %c0_i32_0 = arith.constant 0 : i32
    %c0_i32_1 = arith.constant 0 : i32
    return %c0_i32, %c0_i32_0 : i32, i32
  }
  func.func @transform_2(%arg0: i32) -> (i32, i32) {
    %c0_i32 = arith.constant 0 : i32
    %c0_i32_0 = arith.constant 0 : i32
    %c0_i32_1 = arith.constant 0 : i32
    return %c0_i32, %c0_i32_0 : i32, i32
  }
  func.func @transform_3(%arg0: i32) -> (i32, i32) {
    %c0_i32 = arith.constant 0 : i32
    %c0_i32_0 = arith.constant 0 : i32
    %c0_i32_1 = arith.constant 0 : i32
    return %c0_i32, %c0_i32_0 : i32, i32
  }
  func.func @transform_4(%arg0: i32) -> (i32, i32) {
    %c0_i32 = arith.constant 0 : i32
    %c0_i32_0 = arith.constant 0 : i32
    %c0_i32_1 = arith.constant 0 : i32
    return %c0_i32, %c0_i32_0 : i32, i32
  }
  func.func @transform_5(%arg0: i32) -> (i32, i32) {
    %c0_i32 = arith.constant 0 : i32
    %c0_i32_0 = arith.constant 0 : i32
    return %arg0, %c0_i32 : i32, i32
  }
}

module attributes {stable_mosaic.version = 11 : i64} {
  func.func @_fused_mlp_kernel(%arg0: i32, %arg1: memref<8x128xf32, #tpu.memory_space<vmem>>, %arg2: memref<128x128xf32, #tpu.memory_space<vmem>>, %arg3: memref<128x128xf32, #tpu.memory_space<vmem>>, %arg4: memref<128x128xf32, #tpu.memory_space<vmem>>, %arg5: memref<3x128xf32, #tpu.memory_space<vmem>>, %arg6: memref<8x128xf32, #tpu.memory_space<vmem>>) attributes {dimension_semantics = [#tpu.dimension_semantics<parallel>], iteration_bounds = array<i64: 1>, scalar_prefetch = 0 : i64, scratch_operands = 0 : i64, tpu.core_type = #tpu.core_type<tc>, window_params = [{transform_indices = @transform_0, window_bounds = array<i64: 8, 128>}, {pipeline_mode = #tpu.pipeline_mode<synchronous>, transform_indices = @transform_1, window_bounds = array<i64: 128, 128>}, {pipeline_mode = #tpu.pipeline_mode<synchronous>, transform_indices = @transform_2, window_bounds = array<i64: 128, 128>}, {pipeline_mode = #tpu.pipeline_mode<synchronous>, transform_indices = @transform_3, window_bounds = array<i64: 128, 128>}, {pipeline_mode = #tpu.pipeline_mode<synchronous>, transform_indices = @transform_4, window_bounds = array<i64: 3, 128>}, {transform_indices = @transform_5, window_bounds = array<i64: 8, 128>}]} {
    %c0 = arith.constant 0 : index
    %c0_0 = arith.constant 0 : index
    %0 = vector.load %arg5[%c0, %c0_0] : memref<3x128xf32, #tpu.memory_space<vmem>>, vector<3x128xf32>
    %c0_1 = arith.constant 0 : index
    %c0_2 = arith.constant 0 : index
    %1 = vector.load %arg1[%c0_1, %c0_2] : memref<8x128xf32, #tpu.memory_space<vmem>>, vector<8x128xf32>
    %c0_3 = arith.constant 0 : index
    %c0_4 = arith.constant 0 : index
    %2 = vector.load %arg2[%c0_3, %c0_4] : memref<128x128xf32, #tpu.memory_space<vmem>>, vector<128x128xf32>
    %cst = arith.constant dense<0.000000e+00> : vector<8x128xf32>
    %3 = tpu.matmul %1, %2, %cst {dimension_numbers = #tpu.dot_dimension_numbers<[1], [0], [0], [1], [0, 0, 1, 1], [], []>} : vector<8x128xf32>, vector<128x128xf32>, vector<8x128xf32> -> vector<8x128xf32>
    %4 = vector.extract_strided_slice %0 {offsets = [0, 0], sizes = [1, 128], strides = [1, 1]} : vector<3x128xf32> to vector<1x128xf32>
    %5 = vector.broadcast %4 : vector<1x128xf32> to vector<8x128xf32>
    %6 = arith.addf %3, %5 : vector<8x128xf32>
    %cst_5 = arith.constant 0.000000e+00 : f32
    %7 = vector.broadcast %cst_5 : f32 to vector<8x128xf32>
    %8 = arith.maximumf %6, %7 : vector<8x128xf32>
    %c0_6 = arith.constant 0 : index
    %c0_7 = arith.constant 0 : index
    %9 = vector.load %arg3[%c0_6, %c0_7] : memref<128x128xf32, #tpu.memory_space<vmem>>, vector<128x128xf32>
    %cst_8 = arith.constant dense<0.000000e+00> : vector<8x128xf32>
    %10 = tpu.matmul %8, %9, %cst_8 {dimension_numbers = #tpu.dot_dimension_numbers<[1], [0], [0], [1], [0, 0, 1, 1], [], []>} : vector<8x128xf32>, vector<128x128xf32>, vector<8x128xf32> -> vector<8x128xf32>
    %11 = vector.extract_strided_slice %0 {offsets = [1, 0], sizes = [1, 128], strides = [1, 1]} : vector<3x128xf32> to vector<1x128xf32>
    %12 = vector.broadcast %11 : vector<1x128xf32> to vector<8x128xf32>
    %13 = arith.addf %10, %12 : vector<8x128xf32>
    %cst_9 = arith.constant 0.000000e+00 : f32
    %14 = vector.broadcast %cst_9 : f32 to vector<8x128xf32>
    %15 = arith.maximumf %13, %14 : vector<8x128xf32>
    %c0_10 = arith.constant 0 : index
    %c0_11 = arith.constant 0 : index
    %16 = vector.load %arg4[%c0_10, %c0_11] : memref<128x128xf32, #tpu.memory_space<vmem>>, vector<128x128xf32>
    %cst_12 = arith.constant dense<0.000000e+00> : vector<8x128xf32>
    %17 = tpu.matmul %15, %16, %cst_12 {dimension_numbers = #tpu.dot_dimension_numbers<[1], [0], [0], [1], [0, 0, 1, 1], [], []>} : vector<8x128xf32>, vector<128x128xf32>, vector<8x128xf32> -> vector<8x128xf32>
    %18 = vector.extract_strided_slice %0 {offsets = [2, 0], sizes = [1, 128], strides = [1, 1]} : vector<3x128xf32> to vector<1x128xf32>
    %19 = vector.broadcast %18 : vector<1x128xf32> to vector<8x128xf32>
    %20 = arith.addf %17, %19 : vector<8x128xf32>
    %c0_13 = arith.constant 0 : index
    %c0_14 = arith.constant 0 : index
    %21 = vector.load %arg6[%c0_13, %c0_14] : memref<8x128xf32, #tpu.memory_space<vmem>>, vector<8x128xf32>
    tpu.vector_store %arg6[%c0_13, %c0_14], %20 {strides = array<i32>} : memref<8x128xf32, #tpu.memory_space<vmem>>, vector<8x128xf32>,
    return
  }
  func.func @transform_0(%arg0: i32) -> (i32, i32) {
    %c0_i32 = arith.constant 0 : i32
    %c0_i32_0 = arith.constant 0 : i32
    return %arg0, %c0_i32 : i32, i32
  }
  func.func @transform_1(%arg0: i32) -> (i32, i32) {
    %c0_i32 = arith.constant 0 : i32
    %c0_i32_0 = arith.constant 0 : i32
    %c0_i32_1 = arith.constant 0 : i32
    return %c0_i32, %c0_i32_0 : i32, i32
  }
  func.func @transform_2(%arg0: i32) -> (i32, i32) {
    %c0_i32 = arith.constant 0 : i32
    %c0_i32_0 = arith.constant 0 : i32
    %c0_i32_1 = arith.constant 0 : i32
    return %c0_i32, %c0_i32_0 : i32, i32
  }
  func.func @transform_3(%arg0: i32) -> (i32, i32) {
    %c0_i32 = arith.constant 0 : i32
    %c0_i32_0 = arith.constant 0 : i32
    %c0_i32_1 = arith.constant 0 : i32
    return %c0_i32, %c0_i32_0 : i32, i32
  }
  func.func @transform_4(%arg0: i32) -> (i32, i32) {
    %c0_i32 = arith.constant 0 : i32
    %c0_i32_0 = arith.constant 0 : i32
    %c0_i32_1 = arith.constant 0 : i32
    return %c0_i32, %c0_i32_0 : i32, i32
  }
  func.func @transform_5(%arg0: i32) -> (i32, i32) {
    %c0_i32 = arith.constant 0 : i32
    %c0_i32_0 = arith.constant 0 : i32
    return %arg0, %c0_i32 : i32, i32
  }
}

</mosaic_0001>

<bundles_post_ra>
// kernel: tpu_custom_call.1
= control target key start
LH: loop header
LB: loop body
LE: loop exit
PB: predicated region body
PF: predicated region fallthrough
CT: control target
= control target key end

     0   :  { %10 = vsyncpa [#allocation3], 0  ;;  %s446_s0 = inlined_call_operand.hbm [shape: f32[8,128], index: 0, kind: input, shape index: {}]   ;;  %s447_s1 = inlined_call_operand.hbm [shape: f32[128,128], index: 1, kind: input, shape index: {}]   ;;  %s448_s2 = inlined_call_operand.hbm [shape: f32[128,128], index: 2, kind: input, shape index: {}]   ;;  %s449_s3 = inlined_call_operand.hbm [shape: f32[128,128], index: 3, kind: input, shape index: {}]   ;;  %s450_s4 = inlined_call_operand.hbm [shape: f32[3,128], index: 4, kind: input, shape index: {}]   ;;  %s451_s5 = inlined_call_operand.hbm [shape: f32[8,128], index: 5, kind: output, shape index: {}]  }
   0x1   :  { %11 = vsyncpa [#allocation6], 0 }
   0x2   :  { %12 = vsyncpa [#allocation9], 0  ;;  %s29_s20 = sshll.u32 %s447_s1, 4  ;;  %s30_s20 = int_to_ptr.hbm [resolvable:$true] %s29_s20 }
   0x3   :  { %13 = vsyncpa [#allocation4], 0  ;;  %s390_s21 = smov [#allocation5]   ;;  %s55_s25 = sshll.u32 %s449_s3, 4  ;;  %s56_s25 = int_to_ptr.hbm [resolvable:$true] %s55_s25 }
   0x4   :  { %s31_s22 = sshll.u32 %s390_s21, 4  ;;  %s391_s26 = smov 128   ;;  %s32_s22 = int_to_ptr.vmem [resolvable:$true] %s31_s22 }
   0x5   :  { %s392_s27 = smov 8   ;;  %s393_s28 = smov [#allocation8]  }
   0x6   :  { %37 = dma.hbm_to_vmem [thread:$0]  %s30_s20, 2048, %s32_s22, [#allocation6], %s391_s26, %s391_s26, %s392_s27  }
   0x7   :  { %s57_s29 = sshll.u32 %s393_s28, 4  ;;  %s19_s7 = sshll.u32 %s446_s0, 4  ;;  %s58_s29 = int_to_ptr.vmem [resolvable:$true] %s57_s29  ;;  %s20_s7 = int_to_ptr.hbm [resolvable:$true] %s19_s7 }
   0x8   :  { %63 = dma.hbm_to_vmem [thread:$0]  %s56_s25, 2048, %s58_s29, [#allocation9], %s391_s26, %s391_s26, %s392_s27  }
   0x9   :  { %s42_s9 = sshll.u32 %s448_s2, 4  ;;  %s394_s10 = smov [#allocation2]   ;;  %s43_s9 = int_to_ptr.hbm [resolvable:$true] %s42_s9 }
   0xa   :  { %s21_s11 = sshll.u32 %s394_s10, 4  ;;  %s395_s3 = smov [#allocation7]   ;;  %s22_s11 = int_to_ptr.vmem [resolvable:$true] %s21_s11 }
   0xb   :  { %24 = dma.hbm_to_vmem [thread:$0]  %s20_s7, 128, %s22_s11, [#allocation3]  }
   0xc   :  { %s44_s12 = sshll.u32 %s395_s3, 4  ;;  %s69_s15 = sshll.u32 %s450_s4, 4  ;;  %s45_s12 = int_to_ptr.vmem [resolvable:$true] %s44_s12  ;;  %s70_s15 = int_to_ptr.hbm [resolvable:$true] %s69_s15 }
   0xd   :  { %50 = dma.hbm_to_vmem [thread:$0]  %s43_s9, 2048, %s45_s12, [#allocation6], %s391_s26, %s391_s26, %s392_s27  }
   0xe   :  { %s396_s0 = smov [#allocation10]  }
   0xf   :  { %s71_s16 = sshll.u32 %s396_s0, 4  ;;  %s72_s16 = int_to_ptr.vmem [resolvable:$true] %s71_s16 }
  0x10   :  { %74 = dma.hbm_to_vmem [thread:$0]  %s70_s15, 64, %s72_s16, [#allocation9]  }
  0x11   :  { %382 = dma.done.wait [#allocation3], 128  }
  0x12   :  { %383 = vsyncadd [#allocation3], 4294967168 }
  0x13   :  { %384 = dma.done.wait [#allocation6], 4096  }
  0x14   :  { %385 = vsyncadd [#allocation6], 4294963200 }
  0x15   :  { %386 = dma.done.wait [#allocation9], 2112  }
  0x16   :  { %387 = vsyncadd [#allocation9], 4294965184  ;;  %v112_v0 = vld [vmem:[#allocation5 + $0x78] sm:$0xff]  ;;  %v111_v1 = vld [vmem:[#allocation5 + $0x70] sm:$0xff]  ;;  %s397_s2 = smov [#allocation11]   ;;  %s218_s19 = sshll.u32 %s451_s5, 4  ;;  %s219_s19 = int_to_ptr.hbm [resolvable:$true] %s218_s19 }
  0x17   :  { %114 = vmatpush.msra.mxu0 %v112_v0  ;;  %v110_v2 = vld [vmem:[#allocation5 + $0x68] sm:$0xff]  ;;  %v109_v3 = vld [vmem:[#allocation5 + $0x60] sm:$0xff]  ;;  %v150_v4 = vld [vmem:[#allocation7 + $0x78] sm:$0xff]  ;;  %s216_s4 = sshll.u32 %s397_s2, 4  ;;  %s217_s4 = int_to_ptr.vmem [resolvable:$true] %s216_s4 }
  0x18   :  { %v108_v5 = vld [vmem:[#allocation5 + $0x58] sm:$0xff]  ;;  %152 = vmatpush.msra.mxu1 %v150_v4  ;;  %v149_v6 = vld [vmem:[#allocation7 + $0x70] sm:$0xff]  ;;  %v148_v7 = vld [vmem:[#allocation7 + $0x68] sm:$0xff] }
  0x19   :  { %115 = vmatpush.msra.mxu0 %v111_v1  ;;  %v107_v8 = vld [vmem:[#allocation5 + $0x50] sm:$0xff]  ;;  %v147_v9 = vld [vmem:[#allocation7 + $0x60] sm:$0xff]  ;;  %v106_v10 = vld [vmem:[#allocation5 + $0x48] sm:$0xff] }
  0x1a   :  { %153 = vmatpush.msra.mxu1 %v149_v6  ;;  %v146_v11 = vld [vmem:[#allocation7 + $0x58] sm:$0xff]  ;;  %v105_v12 = vld [vmem:[#allocation5 + $0x40] sm:$0xff]  ;;  %v145_v13 = vld [vmem:[#allocation7 + $0x50] sm:$0xff] }
  0x1b   :  { %116 = vmatpush.msra.mxu0 %v110_v2  ;;  %v104_v14 = vld [vmem:[#allocation5 + $0x38] sm:$0xff]  ;;  %v144_v15 = vld [vmem:[#allocation7 + $0x48] sm:$0xff]  ;;  %v103_v16 = vld [vmem:[#allocation5 + $0x30] sm:$0xff] }
  0x1c   :  { %154 = vmatpush.msra.mxu1 %v148_v7  ;;  %v143_v17 = vld [vmem:[#allocation7 + $0x40] sm:$0xff]  ;;  %v102_v18 = vld [vmem:[#allocation5 + $0x28] sm:$0xff]  ;;  %v142_v19 = vld [vmem:[#allocation7 + $0x38] sm:$0xff] }
  0x1d   :  { %117 = vmatpush.msra.mxu0 %v109_v3  ;;  %v101_v20 = vld [vmem:[#allocation5 + $0x20] sm:$0xff]  ;;  %v141_v21 = vld [vmem:[#allocation7 + $0x30] sm:$0xff]  ;;  %v100_v22 = vld [vmem:[#allocation5 + $0x18] sm:$0xff] }
  0x1e   :  { %155 = vmatpush.msra.mxu1 %v147_v9  ;;  %v140_v23 = vld [vmem:[#allocation7 + $0x28] sm:$0xff]  ;;  %v99_v24 = vld [vmem:[#allocation5 + $0x10] sm:$0xff]  ;;  %v139_v25 = vld [vmem:[#allocation7 + $0x20] sm:$0xff] }
  0x1f   :  { %118 = vmatpush.msra.mxu0 %v108_v5  ;;  %v98_v26 = vld [vmem:[#allocation5 + $0x8] sm:$0xff]  ;;  %v138_v27 = vld [vmem:[#allocation7 + $0x18] sm:$0xff]  ;;  %v97_v28 = vld [vmem:[#allocation5] sm:$0xff] }
  0x20   :  { %156 = vmatpush.msra.mxu1 %v146_v11  ;;  %v96_v29 = vld [vmem:[#allocation2] sm:$0xff]  ;;  %v137_v30 = vld [vmem:[#allocation7 + $0x10] sm:$0xff]  ;;  %v136_v31 = vld [vmem:[#allocation7 + $0x8] sm:$0xff] }
  0x21   :  { %119 = vmatpush.msra.mxu0 %v107_v8  ;;  %v135_v32 = vld [vmem:[#allocation7] sm:$0xff]  ;;  %v188_v33 = vld [vmem:[#allocation8 + $0x78] sm:$0xff]  ;;  %v187_v34 = vld [vmem:[#allocation8 + $0x70] sm:$0xff] }
  0x22   :  { %157 = vmatpush.msra.mxu1 %v145_v13  ;;  %190 = vmatpush.msra.mxu2 %v188_v33  ;;  %v186_v35 = vld [vmem:[#allocation8 + $0x68] sm:$0xff]  ;;  %v185_v36 = vld [vmem:[#allocation8 + $0x60] sm:$0xff]  ;;  %v184_v37 = vld [vmem:[#allocation8 + $0x58] sm:$0xff] }
  0x23   :  { %120 = vmatpush.msra.mxu0 %v106_v10  ;;  %v183_v38 = vld [vmem:[#allocation8 + $0x50] sm:$0xff]  ;;  %v182_v39 = vld [vmem:[#allocation8 + $0x48] sm:$0xff]  ;;  %v181_v40 = vld [vmem:[#allocation8 + $0x40] sm:$0xff] }
  0x24   :  { %158 = vmatpush.msra.mxu1 %v144_v15  ;;  %191 = vmatpush.msra.mxu2 %v187_v34  ;;  %v180_v41 = vld [vmem:[#allocation8 + $0x38] sm:$0xff]  ;;  %v179_v42 = vld [vmem:[#allocation8 + $0x30] sm:$0xff]  ;;  %v178_v43 = vld [vmem:[#allocation8 + $0x28] sm:$0xff] }
  0x25   :  { %121 = vmatpush.msra.mxu0 %v105_v12  ;;  %v177_v44 = vld [vmem:[#allocation8 + $0x20] sm:$0xff]  ;;  %v176_v46 = vld [vmem:[#allocation8 + $0x18] sm:$0xff]  ;;  %v175_v51 = vld [vmem:[#allocation8 + $0x10] sm:$0xff] }
  0x26   :  { %159 = vmatpush.msra.mxu1 %v143_v17  ;;  %192 = vmatpush.msra.mxu2 %v186_v35  ;;  %v95_v45 = vld [vmem:[#allocation10] sm:$0x7]  ;;  %v174_v52 = vld [vmem:[#allocation8 + $0x8] sm:$0xff] }
  0x27   :  { %122 = vmatpush.msra.mxu0 %v104_v14  ;;  %v113_v47 = vperm.slane %v95_v45, 0  ;;  %v173_v53 = vld [vmem:[#allocation8] sm:$0xff]  ;;  %v151_v54 = vperm.slane %v95_v45, 1  ;;  %v189_v58 = vperm.slane %v95_v45, 2 }
  0x28   :  { %160 = vmatpush.msra.mxu1 %v142_v19  ;;  %193 = vmatpush.msra.mxu2 %v185_v36 }
  0x29   :  { %123 = vmatpush.msra.mxu0 %v103_v16 }
  0x2a   :  { %161 = vmatpush.msra.mxu1 %v141_v21  ;;  %194 = vmatpush.msra.mxu2 %v184_v37 }
  0x2b   :  { %124 = vmatpush.msra.mxu0 %v102_v18 }
  0x2c   :  { %162 = vmatpush.msra.mxu1 %v140_v23  ;;  %195 = vmatpush.msra.mxu2 %v183_v38 }
  0x2d   :  { %125 = vmatpush.msra.mxu0 %v101_v20 }
  0x2e   :  { %163 = vmatpush.msra.mxu1 %v139_v25  ;;  %196 = vmatpush.msra.mxu2 %v182_v39 }
  0x2f   :  { %126 = vmatpush.msra.mxu0 %v100_v22 }
  0x30   :  { %164 = vmatpush.msra.mxu1 %v138_v27  ;;  %197 = vmatpush.msra.mxu2 %v181_v40 }
  0x31   :  { %127 = vmatpush.msra.mxu0 %v99_v24 }
  0x32   :  { %165 = vmatpush.msra.mxu1 %v137_v30  ;;  %198 = vmatpush.msra.mxu2 %v180_v41 }
  0x33   :  { %128 = vmatpush.msra.mxu0 %v98_v26 }
  0x34   :  { %166 = vmatpush.msra.mxu1 %v136_v31  ;;  %199 = vmatpush.msra.mxu2 %v179_v42 }
  0x35   :  { %129 = vmatpush.msra.mxu0 %v97_v28 }
  0x36   :  { %130 = vmatmul.f32.vlgmr.msra.gmra.mxu0 %v96_v29  ;;  %167 = vmatpush.msra.mxu1 %v135_v32 }
  0x37   :  { %200 = vmatpush.msra.mxu2 %v178_v43 }
  0x39   :  { %201 = vmatpush.msra.mxu2 %v177_v44 }
  0x3b   :  { %202 = vmatpush.msra.mxu2 %v176_v46 }
  0x3d   :  { %203 = vmatpush.msra.mxu2 %v175_v51 }
  0x3f   :  { %204 = vmatpush.msra.mxu2 %v174_v52 }
  0x41   :  { %205 = vmatpush.msra.mxu2 %v173_v53 }
  0xb3   :  { %v131_v48 = vpop.f32.mrf.mxu0 }
  0xb4   :  { %v132_v49 = vadd.f32 %v131_v48, %v113_v47 }
  0xb6   :  { %v134_v50 = vmax.f32 %v132_v49, 0.0 }
  0xb8   :  { %168 = vmatmul.f32.vlgmr.msra.gmra.mxu1 %v134_v50 }
 0x135   :  { %v169_v55 = vpop.f32.mrf.mxu1 }
 0x136   :  { %v170_v56 = vadd.f32 %v169_v55, %v151_v54 }
 0x138   :  { %v172_v57 = vmax.f32 %v170_v56, 0.0 }
 0x13a   :  { %206 = vmatmul.f32.vlgmr.msra.gmra.mxu2 %v172_v57 }
 0x1bd   :  { %v207_v59 = vpop.f32.mrf.mxu2 }
 0x1be   :  { %v208_v60 = vadd.f32 %v207_v59, %v189_v58 }
 0x1c0   :  { %210 = vst [vmem:[#allocation11] sm:$0xff] %v208_v60 }
 0x1c1   :  { %221 = dma.vmem_to_hbm [thread:$0]  %s217_s4, 128, %s219_s19, [#allocation4]  }
 0x1c2   :  { %388 = dma.done.wait [#allocation4], 128  }
 0x1c3   :  { %389 = vsyncadd [#allocation4], 4294967168 }
 0x1c4   :  { %226 = vsyncpa [#allocation3], 1 }
 0x1c5   :  { %227 = vsyncpa [#allocation6], 1 }
 0x1c6   :  { %228 = vsyncpa [#allocation9], 1 }
 0x1c7   :  { %229 = vsyncpa [#allocation4], 1 }

// kernel: tpu_custom_call.1
= control target key start
LH: loop header
LB: loop body
LE: loop exit
PB: predicated region body
PF: predicated region fallthrough
CT: control target
= control target key end

     0   :  { %10 = vsyncpa [#allocation3], 0  ;;  %s446_s0 = inlined_call_operand.hbm [shape: f32[8,128], index: 0, kind: input, shape index: {}]   ;;  %s447_s1 = inlined_call_operand.hbm [shape: f32[128,128], index: 1, kind: input, shape index: {}]   ;;  %s448_s2 = inlined_call_operand.hbm [shape: f32[128,128], index: 2, kind: input, shape index: {}]   ;;  %s449_s3 = inlined_call_operand.hbm [shape: f32[128,128], index: 3, kind: input, shape index: {}]   ;;  %s450_s4 = inlined_call_operand.hbm [shape: f32[3,128], index: 4, kind: input, shape index: {}]   ;;  %s451_s5 = inlined_call_operand.hbm [shape: f32[8,128], index: 5, kind: output, shape index: {}]  }
   0x1   :  { %11 = vsyncpa [#allocation6], 0 }
   0x2   :  { %12 = vsyncpa [#allocation9], 0  ;;  %s29_s20 = sshll.u32 %s447_s1, 4  ;;  %s30_s20 = int_to_ptr.hbm [resolvable:$true] %s29_s20 }
   0x3   :  { %13 = vsyncpa [#allocation4], 0  ;;  %s390_s21 = smov [#allocation5]   ;;  %s55_s25 = sshll.u32 %s449_s3, 4  ;;  %s56_s25 = int_to_ptr.hbm [resolvable:$true] %s55_s25 }
   0x4   :  { %s31_s22 = sshll.u32 %s390_s21, 4  ;;  %s391_s26 = smov 128   ;;  %s32_s22 = int_to_ptr.vmem [resolvable:$true] %s31_s22 }
   0x5   :  { %s392_s27 = smov 8   ;;  %s393_s28 = smov [#allocation8]  }
   0x6   :  { %37 = dma.hbm_to_vmem [thread:$0]  %s30_s20, 2048, %s32_s22, [#allocation6], %s391_s26, %s391_s26, %s392_s27  }
   0x7   :  { %s57_s29 = sshll.u32 %s393_s28, 4  ;;  %s19_s7 = sshll.u32 %s446_s0, 4  ;;  %s58_s29 = int_to_ptr.vmem [resolvable:$true] %s57_s29  ;;  %s20_s7 = int_to_ptr.hbm [resolvable:$true] %s19_s7 }
   0x8   :  { %63 = dma.hbm_to_vmem [thread:$0]  %s56_s25, 2048, %s58_s29, [#allocation9], %s391_s26, %s391_s26, %s392_s27  }
   0x9   :  { %s42_s9 = sshll.u32 %s448_s2, 4  ;;  %s394_s10 = smov [#allocation2]   ;;  %s43_s9 = int_to_ptr.hbm [resolvable:$true] %s42_s9 }
   0xa   :  { %s21_s11 = sshll.u32 %s394_s10, 4  ;;  %s395_s3 = smov [#allocation7]   ;;  %s22_s11 = int_to_ptr.vmem [resolvable:$true] %s21_s11 }
   0xb   :  { %24 = dma.hbm_to_vmem [thread:$0]  %s20_s7, 128, %s22_s11, [#allocation3]  }
   0xc   :  { %s44_s12 = sshll.u32 %s395_s3, 4  ;;  %s69_s15 = sshll.u32 %s450_s4, 4  ;;  %s45_s12 = int_to_ptr.vmem [resolvable:$true] %s44_s12  ;;  %s70_s15 = int_to_ptr.hbm [resolvable:$true] %s69_s15 }
   0xd   :  { %50 = dma.hbm_to_vmem [thread:$0]  %s43_s9, 2048, %s45_s12, [#allocation6], %s391_s26, %s391_s26, %s392_s27  }
   0xe   :  { %s396_s0 = smov [#allocation10]  }
   0xf   :  { %s71_s16 = sshll.u32 %s396_s0, 4  ;;  %s72_s16 = int_to_ptr.vmem [resolvable:$true] %s71_s16 }
  0x10   :  { %74 = dma.hbm_to_vmem [thread:$0]  %s70_s15, 64, %s72_s16, [#allocation9]  }
  0x11   :  { %382 = dma.done.wait [#allocation3], 128  }
  0x12   :  { %383 = vsyncadd [#allocation3], 4294967168 }
  0x13   :  { %384 = dma.done.wait [#allocation6], 4096  }
  0x14   :  { %385 = vsyncadd [#allocation6], 4294963200 }
  0x15   :  { %386 = dma.done.wait [#allocation9], 2112  }
  0x16   :  { %387 = vsyncadd [#allocation9], 4294965184  ;;  %v112_v0 = vld [vmem:[#allocation5 + $0x78] sm:$0xff]  ;;  %v111_v1 = vld [vmem:[#allocation5 + $0x70] sm:$0xff]  ;;  %s397_s2 = smov [#allocation11]   ;;  %s218_s19 = sshll.u32 %s451_s5, 4  ;;  %s219_s19 = int_to_ptr.hbm [resolvable:$true] %s218_s19 }
  0x17   :  { %114 = vmatpush.msra.mxu0 %v112_v0  ;;  %v110_v2 = vld [vmem:[#allocation5 + $0x68] sm:$0xff]  ;;  %v109_v3 = vld [vmem:[#allocation5 + $0x60] sm:$0xff]  ;;  %v150_v4 = vld [vmem:[#allocation7 + $0x78] sm:$0xff]  ;;  %s216_s4 = sshll.u32 %s397_s2, 4  ;;  %s217_s4 = int_to_ptr.vmem [resolvable:$true] %s216_s4 }
  0x18   :  { %v108_v5 = vld [vmem:[#allocation5 + $0x58] sm:$0xff]  ;;  %152 = vmatpush.msra.mxu1 %v150_v4  ;;  %v149_v6 = vld [vmem:[#allocation7 + $0x70] sm:$0xff]  ;;  %v148_v7 = vld [vmem:[#allocation7 + $0x68] sm:$0xff] }
  0x19   :  { %115 = vmatpush.msra.mxu0 %v111_v1  ;;  %v107_v8 = vld [vmem:[#allocation5 + $0x50] sm:$0xff]  ;;  %v147_v9 = vld [vmem:[#allocation7 + $0x60] sm:$0xff]  ;;  %v106_v10 = vld [vmem:[#allocation5 + $0x48] sm:$0xff] }
  0x1a   :  { %153 = vmatpush.msra.mxu1 %v149_v6  ;;  %v146_v11 = vld [vmem:[#allocation7 + $0x58] sm:$0xff]  ;;  %v105_v12 = vld [vmem:[#allocation5 + $0x40] sm:$0xff]  ;;  %v145_v13 = vld [vmem:[#allocation7 + $0x50] sm:$0xff] }
  0x1b   :  { %116 = vmatpush.msra.mxu0 %v110_v2  ;;  %v104_v14 = vld [vmem:[#allocation5 + $0x38] sm:$0xff]  ;;  %v144_v15 = vld [vmem:[#allocation7 + $0x48] sm:$0xff]  ;;  %v103_v16 = vld [vmem:[#allocation5 + $0x30] sm:$0xff] }
  0x1c   :  { %154 = vmatpush.msra.mxu1 %v148_v7  ;;  %v143_v17 = vld [vmem:[#allocation7 + $0x40] sm:$0xff]  ;;  %v102_v18 = vld [vmem:[#allocation5 + $0x28] sm:$0xff]  ;;  %v142_v19 = vld [vmem:[#allocation7 + $0x38] sm:$0xff] }
  0x1d   :  { %117 = vmatpush.msra.mxu0 %v109_v3  ;;  %v101_v20 = vld [vmem:[#allocation5 + $0x20] sm:$0xff]  ;;  %v141_v21 = vld [vmem:[#allocation7 + $0x30] sm:$0xff]  ;;  %v100_v22 = vld [vmem:[#allocation5 + $0x18] sm:$0xff] }
  0x1e   :  { %155 = vmatpush.msra.mxu1 %v147_v9  ;;  %v140_v23 = vld [vmem:[#allocation7 + $0x28] sm:$0xff]  ;;  %v99_v24 = vld [vmem:[#allocation5 + $0x10] sm:$0xff]  ;;  %v139_v25 = vld [vmem:[#allocation7 + $0x20] sm:$0xff] }
  0x1f   :  { %118 = vmatpush.msra.mxu0 %v108_v5  ;;  %v98_v26 = vld [vmem:[#allocation5 + $0x8] sm:$0xff]  ;;  %v138_v27 = vld [vmem:[#allocation7 + $0x18] sm:$0xff]  ;;  %v97_v28 = vld [vmem:[#allocation5] sm:$0xff] }
  0x20   :  { %156 = vmatpush.msra.mxu1 %v146_v11  ;;  %v96_v29 = vld [vmem:[#allocation2] sm:$0xff]  ;;  %v137_v30 = vld [vmem:[#allocation7 + $0x10] sm:$0xff]  ;;  %v136_v31 = vld [vmem:[#allocation7 + $0x8] sm:$0xff] }
  0x21   :  { %119 = vmatpush.msra.mxu0 %v107_v8  ;;  %v135_v32 = vld [vmem:[#allocation7] sm:$0xff]  ;;  %v188_v33 = vld [vmem:[#allocation8 + $0x78] sm:$0xff]  ;;  %v187_v34 = vld [vmem:[#allocation8 + $0x70] sm:$0xff] }
  0x22   :  { %157 = vmatpush.msra.mxu1 %v145_v13  ;;  %190 = vmatpush.msra.mxu2 %v188_v33  ;;  %v186_v35 = vld [vmem:[#allocation8 + $0x68] sm:$0xff]  ;;  %v185_v36 = vld [vmem:[#allocation8 + $0x60] sm:$0xff]  ;;  %v184_v37 = vld [vmem:[#allocation8 + $0x58] sm:$0xff] }
  0x23   :  { %120 = vmatpush.msra.mxu0 %v106_v10  ;;  %v183_v38 = vld [vmem:[#allocation8 + $0x50] sm:$0xff]  ;;  %v182_v39 = vld [vmem:[#allocation8 + $0x48] sm:$0xff]  ;;  %v181_v40 = vld [vmem:[#allocation8 + $0x40] sm:$0xff] }
  0x24   :  { %158 = vmatpush.msra.mxu1 %v144_v15  ;;  %191 = vmatpush.msra.mxu2 %v187_v34  ;;  %v180_v41 = vld [vmem:[#allocation8 + $0x38] sm:$0xff]  ;;  %v179_v42 = vld [vmem:[#allocation8 + $0x30] sm:$0xff]  ;;  %v178_v43 = vld [vmem:[#allocation8 + $0x28] sm:$0xff] }
  0x25   :  { %121 = vmatpush.msra.mxu0 %v105_v12  ;;  %v177_v44 = vld [vmem:[#allocation8 + $0x20] sm:$0xff]  ;;  %v176_v46 = vld [vmem:[#allocation8 + $0x18] sm:$0xff]  ;;  %v175_v51 = vld [vmem:[#allocation8 + $0x10] sm:$0xff] }
  0x26   :  { %159 = vmatpush.msra.mxu1 %v143_v17  ;;  %192 = vmatpush.msra.mxu2 %v186_v35  ;;  %v95_v45 = vld [vmem:[#allocation10] sm:$0x7]  ;;  %v174_v52 = vld [vmem:[#allocation8 + $0x8] sm:$0xff] }
  0x27   :  { %122 = vmatpush.msra.mxu0 %v104_v14  ;;  %v113_v47 = vperm.slane %v95_v45, 0  ;;  %v173_v53 = vld [vmem:[#allocation8] sm:$0xff]  ;;  %v151_v54 = vperm.slane %v95_v45, 1  ;;  %v189_v58 = vperm.slane %v95_v45, 2 }
  0x28   :  { %160 = vmatpush.msra.mxu1 %v142_v19  ;;  %193 = vmatpush.msra.mxu2 %v185_v36 }
  0x29   :  { %123 = vmatpush.msra.mxu0 %v103_v16 }
  0x2a   :  { %161 = vmatpush.msra.mxu1 %v141_v21  ;;  %194 = vmatpush.msra.mxu2 %v184_v37 }
  0x2b   :  { %124 = vmatpush.msra.mxu0 %v102_v18 }
  0x2c   :  { %162 = vmatpush.msra.mxu1 %v140_v23  ;;  %195 = vmatpush.msra.mxu2 %v183_v38 }
  0x2d   :  { %125 = vmatpush.msra.mxu0 %v101_v20 }
  0x2e   :  { %163 = vmatpush.msra.mxu1 %v139_v25  ;;  %196 = vmatpush.msra.mxu2 %v182_v39 }
  0x2f   :  { %126 = vmatpush.msra.mxu0 %v100_v22 }
  0x30   :  { %164 = vmatpush.msra.mxu1 %v138_v27  ;;  %197 = vmatpush.msra.mxu2 %v181_v40 }
  0x31   :  { %127 = vmatpush.msra.mxu0 %v99_v24 }
  0x32   :  { %165 = vmatpush.msra.mxu1 %v137_v30  ;;  %198 = vmatpush.msra.mxu2 %v180_v41 }
  0x33   :  { %128 = vmatpush.msra.mxu0 %v98_v26 }
  0x34   :  { %166 = vmatpush.msra.mxu1 %v136_v31  ;;  %199 = vmatpush.msra.mxu2 %v179_v42 }
  0x35   :  { %129 = vmatpush.msra.mxu0 %v97_v28 }
  0x36   :  { %130 = vmatmul.f32.vlgmr.msra.gmra.mxu0 %v96_v29  ;;  %167 = vmatpush.msra.mxu1 %v135_v32 }
  0x37   :  { %200 = vmatpush.msra.mxu2 %v178_v43 }
  0x39   :  { %201 = vmatpush.msra.mxu2 %v177_v44 }
  0x3b   :  { %202 = vmatpush.msra.mxu2 %v176_v46 }
  0x3d   :  { %203 = vmatpush.msra.mxu2 %v175_v51 }
  0x3f   :  { %204 = vmatpush.msra.mxu2 %v174_v52 }
  0x41   :  { %205 = vmatpush.msra.mxu2 %v173_v53 }
  0xb3   :  { %v131_v48 = vpop.f32.mrf.mxu0 }
  0xb4   :  { %v132_v49 = vadd.f32 %v131_v48, %v113_v47 }
  0xb6   :  { %v134_v50 = vmax.f32 %v132_v49, 0.0 }
  0xb8   :  { %168 = vmatmul.f32.vlgmr.msra.gmra.mxu1 %v134_v50 }
 0x135   :  { %v169_v55 = vpop.f32.mrf.mxu1 }
 0x136   :  { %v170_v56 = vadd.f32 %v169_v55, %v151_v54 }
 0x138   :  { %v172_v57 = vmax.f32 %v170_v56, 0.0 }
 0x13a   :  { %206 = vmatmul.f32.vlgmr.msra.gmra.mxu2 %v172_v57 }
 0x1bd   :  { %v207_v59 = vpop.f32.mrf.mxu2 }
 0x1be   :  { %v208_v60 = vadd.f32 %v207_v59, %v189_v58 }
 0x1c0   :  { %210 = vst [vmem:[#allocation11] sm:$0xff] %v208_v60 }
 0x1c1   :  { %221 = dma.vmem_to_hbm [thread:$0]  %s217_s4, 128, %s219_s19, [#allocation4]  }
 0x1c2   :  { %388 = dma.done.wait [#allocation4], 128  }
 0x1c3   :  { %389 = vsyncadd [#allocation4], 4294967168 }
 0x1c4   :  { %226 = vsyncpa [#allocation3], 1 }
 0x1c5   :  { %227 = vsyncpa [#allocation6], 1 }
 0x1c6   :  { %228 = vsyncpa [#allocation9], 1 }
 0x1c7   :  { %229 = vsyncpa [#allocation4], 1 }

</bundles_post_ra>
